<compile_context>
chip_gen: v7x
topology: tpu7x:2x2x1
jax: 0.10.0
libtpu: 0.0.40
codegen_flags: <defaults>
</compile_context>

<pallas_src>
import math

import jax
import jax.numpy as jnp
from jax.experimental import pallas as pl
from jax.experimental.pallas import tpu as pltpu


def _round_up(x, m):
    return ((x + m - 1) // m) * m


def widedeep_kernel(
    # activation tiles (f32 straight from HBM)
    wide_ref, deep_ref, sqlco_ref,
    # deep tower
    w1_ref, b1_ref, w2_ref, b2_ref,
    # fused fc3 / fc_sql / fc_co (block-diagonal, 80-wide output)
    w3p_ref, wscp_ref, b_fuse_ref,
    # fc_comb on the fused 80-wide activation
    wc_ref, bc_ref,
    # fc_final, split as f32 row vectors for the VPU path
    wfc_ref, wfw_ref, bf_ref,
    # output tile
    out_ref,
):
    f32 = jnp.float32
    bf16 = jnp.bfloat16

    # Cast to bf16 in-kernel (MXU inputs); wide stays f32 — it only feeds the
    # f32 VPU path of fc_final, so no precision is thrown away on it.
    wide = wide_ref[...]                      # (TB, W)   f32
    deep = deep_ref[...].astype(bf16)         # (TB, D)   bf16
    sqlco = sqlco_ref[...].astype(bf16)       # (TB, S+C) bf16

    # Deep tower: fc1 -> relu -> fc2 -> relu (dropout = identity in eval)
    out1 = jnp.maximum(
        jnp.dot(deep, w1_ref[...], preferred_element_type=f32) + b1_ref[...], 0.0)
    out2 = jnp.maximum(
        jnp.dot(out1.astype(bf16), w2_ref[...], preferred_element_type=f32)
        + b2_ref[...], 0.0)

    # Fused fc3 / fc_sql / fc_co: two partial dots onto an 80-wide output
    # (cols 0:32 = out_deep, 32:48 = out_sql, 48:80 = out_co). Zero padding in
    # the packed weights guarantees no cross-contamination -> exact fusion.
    fused = (
        jnp.dot(out2.astype(bf16), w3p_ref[...], preferred_element_type=f32)
        + jnp.dot(sqlco, wscp_ref[...], preferred_element_type=f32)
        + b_fuse_ref[...]
    )
    fused = jnp.maximum(fused, 0.0)   # == concat([out_deep, out_sql, out_co], dim=1)

    # fc_comb on the (already fused) 80-wide activation: a single dot.
    out_comb = jnp.maximum(
        jnp.dot(fused.astype(bf16), wc_ref[...], preferred_element_type=f32)
        + bc_ref[...], 0.0)

    # fc_final on concat([out_comb, wide_x], dim=1): N=1, so do it on the
    # VPU (multiply) + XLU (lane reduction) instead of wasting an MXU pass.
    logits = (
        jnp.sum(out_comb * wfc_ref[...], axis=-1, keepdims=True)
        + jnp.sum(wide * wfw_ref[...], axis=-1, keepdims=True)
        + bf_ref[...]
    )
    out_ref[...] = jax.nn.sigmoid(logits)


def widedeep_forward(wide_x, deep_x, sql_x, co_x, kparams, *,
                     block_batch=4096, vmem_limit_bytes=None):
    """WideDeep forward pass. Inputs are f32 (batch, feature) arrays.

    block_batch: batch tile (rows per grid step); default 4096 amortizes the
      ~0.35 us per-step overhead to <3% and fits v5e/v6e/v7x VMEM with the
      default vmem budget.  For tiles > 4096 pass vmem_limit_bytes explicitly.
    """
    batch = wide_x.shape[0]
    # tb must be a multiple of 8 (sublane tiling); min() of two multiples of 8.
    tb = min(max(8, _round_up(block_batch, 8)), _round_up(batch, 8))
    grid = (pl.cdiv(batch, tb),)   # partial last block handled by Pallas masking

    if vmem_limit_bytes is None:
        # ~5-6 KiB/row of temporaries + double-buffered f32 activation tiles
        # + VMEM-resident weights; clamp to [32 MiB, 48 MiB] so the default
        # stays under v7x's 64 MiB per-TC VMEM (v5e/v6e have 128 MiB).
        vmem_limit_bytes = min(48 << 20, max(32 << 20, tb * 8 * 1024 + (6 << 20)))

    # Only wrapper-side op: cheap f32 concat of the two narrow side inputs so
    # fc_sql / fc_co share one block-diagonal MXU pass in-kernel (48 cols of
    # extra HBM traffic is cheaper than an extra vmatmul push per row-group).
    sqlco_x = jnp.concatenate([sql_x, co_x], axis=1)

    weights = (
        kparams["w1"], kparams["b1"], kparams["w2"], kparams["b2"],
        kparams["w3p"], kparams["wscp"], kparams["b_fuse"],
        kparams["wc"], kparams["bc"],
        kparams["wfc"], kparams["wfw"], kparams["bf"],
    )

    def act_spec(f):
        return pl.BlockSpec((tb, f), lambda i: (i, 0))

    def const_spec(a):
        # full-array block, constant index_map -> DMA'd once, VMEM-resident
        return pl.BlockSpec(a.shape, lambda i: (0, 0))

    out = pl.pallas_call(
        widedeep_kernel,
        out_shape=jax.ShapeDtypeStruct((batch, 1), jnp.float32),
        grid=grid,
        in_specs=[
            act_spec(wide_x.shape[1]),
            act_spec(deep_x.shape[1]),
            act_spec(sqlco_x.shape[1]),
        ] + [const_spec(w) for w in weights],
        out_specs=pl.BlockSpec((tb, 1), lambda i: (i, 0)),
        compiler_params=pltpu.CompilerParams(
            dimension_semantics=("parallel",),   # lets v7x split batch over 2 TCs
            vmem_limit_bytes=int(vmem_limit_bytes),
        ),
    )(wide_x, deep_x, sqlco_x, *weights)

    return out


def init_params(key, input_size):
    """nn.Linear-style init; weights stored (in_features, out_features)."""
    def linear(key, fan_in, fan_out):
        kw, kb = jax.random.split(key)
        bound = 1.0 / math.sqrt(fan_in)
        w = jax.random.uniform(kw, (fan_in, fan_out), jnp.float32, -bound, bound)
        b = jax.random.uniform(kb, (fan_out,), jnp.float32, -bound, bound)
        return w, b

    keys = jax.random.split(key, 7)
    p = {}
    p["fc1"] = linear(keys[0], input_size["deep"], 256)
    p["fc2"] = linear(keys[1], 256, 256)
    p["fc3"] = linear(keys[2], 256, 32)
    p["fc_sql"] = linear(keys[3], input_size["sql"], 16)
    p["fc_co"] = linear(keys[4], input_size["co"], 32)
    p["fc_comb"] = linear(keys[5], 32 + 16 + 32, 32)
    p["fc_final"] = linear(keys[6], 32 + input_size["wide"], 1)
    return p


def pack_params(p, input_size):
    """Pack natural nn.Linear params into the kernel's fused bf16 layout."""
    bf16 = jnp.bfloat16
    d_sql, d_co = input_size["sql"], input_size["co"]

    w1, b1 = p["fc1"]
    w2, b2 = p["fc2"]
    w3, b3 = p["fc3"]
    wsql, bsql = p["fc_sql"]
    wco, bco = p["fc_co"]
    wc, bc = p["fc_comb"]
    wf, bf = p["fc_final"]

    # fc3 zero-padded to the 80-wide fused output (cols 0:32)
    w3p = jnp.zeros((256, 80), jnp.float32).at[:, :32].set(w3)
    # fc_sql / fc_co block-diagonal over concat([sql, co]) input,
    # landing in fused cols 32:48 and 48:80
    wscp = jnp.zeros((d_sql + d_co, 80), jnp.float32)
    wscp = wscp.at[:d_sql, 32:48].set(wsql)
    wscp = wscp.at[d_sql:, 48:80].set(wco)
    b_fuse = jnp.concatenate([b3, bsql, bco])[None, :]

    return {
        "w1": w1.astype(bf16), "b1": b1[None, :],
        "w2": w2.astype(bf16), "b2": b2[None, :],
        "w3p": w3p.astype(bf16), "wscp": wscp.astype(bf16), "b_fuse": b_fuse,
        "wc": wc.astype(bf16), "bc": bc[None, :],
        # fc_final as f32 row vectors for the VPU path (kept in full precision)
        "wfc": wf[:32, 0][None, :], "wfw": wf[32:, 0][None, :], "bf": bf[None, :],
    }


def widedeep_reference(wide_x, deep_x, sql_x, co_x, p):
    """Pure-JAX f32 reference matching the PyTorch module in eval mode."""
    relu = lambda x: jnp.maximum(x, 0.0)
    out1 = relu(deep_x @ p["fc1"][0] + p["fc1"][1])
    out2 = relu(out1 @ p["fc2"][0] + p["fc2"][1])
    out_deep = relu(out2 @ p["fc3"][0] + p["fc3"][1])
    out_sql = relu(sql_x @ p["fc_sql"][0] + p["fc_sql"][1])
    out_co = relu(co_x @ p["fc_co"][0] + p["fc_co"][1])
    in_comb = jnp.concatenate([out_deep, out_sql, out_co], axis=1)
    out_comb = relu(in_comb @ p["fc_comb"][0] + p["fc_comb"][1])
    in_final = jnp.concatenate([out_comb, wide_x], axis=1)
    return jax.nn.sigmoid(in_final @ p["fc_final"][0] + p["fc_final"][1])


if __name__ == "__main__":
    input_size = {"deep": 64, "sql": 16, "co": 32, "wide": 8}
    batch = 64

    key = jax.random.PRNGKey(0)
    k_wide, k_deep, k_sql, k_co, k_params = jax.random.split(key, 5)

    wide_x = jax.random.normal(k_wide, (batch, input_size["wide"]), jnp.float32)
    deep_x = jax.random.normal(k_deep, (batch, input_size["deep"]), jnp.float32)
    sql_x = jax.random.normal(k_sql, (batch, input_size["sql"]), jnp.float32)
    co_x = jax.random.normal(k_co, (batch, input_size["co"]), jnp.float32)

    params = init_params(k_params, input_size)
    kparams = pack_params(params, input_size)
    ref = widedeep_reference(wide_x, deep_x, sql_x, co_x, params)

    # 1) Small tile so the test exercises a multi-step grid AND a partial last
    #    block (grid = cdiv(64, 24) = 3; last block rows 48..71 -> 64..71 OOB
    #    must be masked/clipped by Pallas).
    out = widedeep_forward(wide_x, deep_x, sql_x, co_x, kparams, block_batch=24)
    out = jax.block_until_ready(out)
    assert out.shape == (batch, 1), out.shape
    assert bool(jnp.all(jnp.isfinite(out)))
    max_err = float(jnp.max(jnp.abs(out - ref)))
    assert max_err < 5e-2, f"max abs error vs f32 reference (tb=24): {max_err}"

    # 2) Default production config (tb clamps to the batch -> grid=(1,)).
    out2 = widedeep_forward(wide_x, deep_x, sql_x, co_x, kparams)
    out2 = jax.block_until_ready(out2)
    max_err2 = float(jnp.max(jnp.abs(out2 - ref)))
    assert max_err2 < 5e-2, f"max abs error vs f32 reference (default): {max_err2}"

    print("KERNEL_OK")
</pallas_src>

<mosaic_0001>
module attributes {stable_mosaic.version = 11 : i64} {
  func.func @widedeep_kernel(%arg0: i32, %arg1: memref<24x8xf32, #tpu.memory_space<vmem>>, %arg2: memref<24x64xf32, #tpu.memory_space<vmem>>, %arg3: memref<24x48xf32, #tpu.memory_space<vmem>>, %arg4: memref<64x256xbf16, #tpu.memory_space<vmem>>, %arg5: memref<1x256xf32, #tpu.memory_space<vmem>>, %arg6: memref<256x256xbf16, #tpu.memory_space<vmem>>, %arg7: memref<1x256xf32, #tpu.memory_space<vmem>>, %arg8: memref<256x80xbf16, #tpu.memory_space<vmem>>, %arg9: memref<48x80xbf16, #tpu.memory_space<vmem>>, %arg10: memref<1x80xf32, #tpu.memory_space<vmem>>, %arg11: memref<80x32xbf16, #tpu.memory_space<vmem>>, %arg12: memref<1x32xf32, #tpu.memory_space<vmem>>, %arg13: memref<1x32xf32, #tpu.memory_space<vmem>>, %arg14: memref<1x8xf32, #tpu.memory_space<vmem>>, %arg15: memref<1x1xf32, #tpu.memory_space<vmem>>, %arg16: memref<24x1xf32, #tpu.memory_space<vmem>>) attributes {dimension_semantics = [#tpu.dimension_semantics<parallel>], iteration_bounds = array<i64: 3>, scalar_prefetch = 0 : i64, scratch_operands = 0 : i64, tpu.core_type = #tpu.core_type<tc>, window_params = [{transform_indices = @transform_0, window_bounds = array<i64: 24, 8>}, {transform_indices = @transform_1, window_bounds = array<i64: 24, 64>}, {transform_indices = @transform_2, window_bounds = array<i64: 24, 48>}, {pipeline_mode = #tpu.pipeline_mode<synchronous>, transform_indices = @transform_3, window_bounds = array<i64: 64, 256>}, {pipeline_mode = #tpu.pipeline_mode<synchronous>, transform_indices = @transform_4, window_bounds = array<i64: 1, 256>}, {pipeline_mode = #tpu.pipeline_mode<synchronous>, transform_indices = @transform_5, window_bounds = array<i64: 256, 256>}, {pipeline_mode = #tpu.pipeline_mode<synchronous>, transform_indices = @transform_6, window_bounds = array<i64: 1, 256>}, {pipeline_mode = #tpu.pipeline_mode<synchronous>, transform_indices = @transform_7, window_bounds = array<i64: 256, 80>}, {pipeline_mode = #tpu.pipeline_mode<synchronous>, transform_indices = @transform_8, window_bounds = array<i64: 48, 80>}, {pipeline_mode = #tpu.pipeline_mode<synchronous>, transform_indices = @transform_9, window_bounds = array<i64: 1, 80>}, {pipeline_mode = #tpu.pipeline_mode<synchronous>, transform_indices = @transform_10, window_bounds = array<i64: 80, 32>}, {pipeline_mode = #tpu.pipeline_mode<synchronous>, transform_indices = @transform_11, window_bounds = array<i64: 1, 32>}, {pipeline_mode = #tpu.pipeline_mode<synchronous>, transform_indices = @transform_12, window_bounds = array<i64: 1, 32>}, {pipeline_mode = #tpu.pipeline_mode<synchronous>, transform_indices = @transform_13, window_bounds = array<i64: 1, 8>}, {pipeline_mode = #tpu.pipeline_mode<synchronous>, transform_indices = @transform_14, window_bounds = array<i64: 1, 1>}, {transform_indices = @transform_15, window_bounds = array<i64: 24, 1>}]} {
    %c0 = arith.constant 0 : index
    %c0_0 = arith.constant 0 : index
    %0 = vector.load %arg1[%c0, %c0_0] : memref<24x8xf32, #tpu.memory_space<vmem>>, vector<24x8xf32>
    %c0_1 = arith.constant 0 : index
    %c0_2 = arith.constant 0 : index
    %1 = vector.load %arg2[%c0_1, %c0_2] : memref<24x64xf32, #tpu.memory_space<vmem>>, vector<24x64xf32>
    %2 = arith.truncf %1 : vector<24x64xf32> to vector<24x64xbf16>
    %c0_3 = arith.constant 0 : index
    %c0_4 = arith.constant 0 : index
    %3 = vector.load %arg3[%c0_3, %c0_4] : memref<24x48xf32, #tpu.memory_space<vmem>>, vector<24x48xf32>
    %4 = arith.truncf %3 : vector<24x48xf32> to vector<24x48xbf16>
    %c0_5 = arith.constant 0 : index
    %c0_6 = arith.constant 0 : index
    %5 = vector.load %arg4[%c0_5, %c0_6] : memref<64x256xbf16, #tpu.memory_space<vmem>>, vector<64x256xbf16>
    %cst = arith.constant dense<0.000000e+00> : vector<24x256xf32>
    %6 = tpu.matmul %2, %5, %cst {dimension_numbers = #tpu.dot_dimension_numbers<[1], [0], [0], [1], [0, 0, 1, 1], [], []>} : vector<24x64xbf16>, vector<64x256xbf16>, vector<24x256xf32> -> vector<24x256xf32>
    %c0_7 = arith.constant 0 : index
    %c0_8 = arith.constant 0 : index
    %7 = vector.load %arg5[%c0_7, %c0_8] : memref<1x256xf32, #tpu.memory_space<vmem>>, vector<1x256xf32>
    %8 = vector.broadcast %7 : vector<1x256xf32> to vector<24x256xf32>
    %9 = arith.addf %6, %8 : vector<24x256xf32>
    %cst_9 = arith.constant 0.000000e+00 : f32
    %10 = vector.broadcast %cst_9 : f32 to vector<24x256xf32>
    %11 = arith.maximumf %9, %10 : vector<24x256xf32>
    %12 = arith.truncf %11 : vector<24x256xf32> to vector<24x256xbf16>
    %c0_10 = arith.constant 0 : index
    %c0_11 = arith.constant 0 : index
    %13 = vector.load %arg6[%c0_10, %c0_11] : memref<256x256xbf16, #tpu.memory_space<vmem>>, vector<256x256xbf16>
    %cst_12 = arith.constant dense<0.000000e+00> : vector<24x256xf32>
    %14 = tpu.matmul %12, %13, %cst_12 {dimension_numbers = #tpu.dot_dimension_numbers<[1], [0], [0], [1], [0, 0, 1, 1], [], []>} : vector<24x256xbf16>, vector<256x256xbf16>, vector<24x256xf32> -> vector<24x256xf32>
    %c0_13 = arith.constant 0 : index
    %c0_14 = arith.constant 0 : index
    %15 = vector.load %arg7[%c0_13, %c0_14] : memref<1x256xf32, #tpu.memory_space<vmem>>, vector<1x256xf32>
    %16 = vector.broadcast %15 : vector<1x256xf32> to vector<24x256xf32>
    %17 = arith.addf %14, %16 : vector<24x256xf32>
    %cst_15 = arith.constant 0.000000e+00 : f32
    %18 = vector.broadcast %cst_15 : f32 to vector<24x256xf32>
    %19 = arith.maximumf %17, %18 : vector<24x256xf32>
    %20 = arith.truncf %19 : vector<24x256xf32> to vector<24x256xbf16>
    %c0_16 = arith.constant 0 : index
    %c0_17 = arith.constant 0 : index
    %21 = vector.load %arg8[%c0_16, %c0_17] : memref<256x80xbf16, #tpu.memory_space<vmem>>, vector<256x80xbf16>
    %cst_18 = arith.constant dense<0.000000e+00> : vector<24x80xf32>
    %22 = tpu.matmul %20, %21, %cst_18 {dimension_numbers = #tpu.dot_dimension_numbers<[1], [0], [0], [1], [0, 0, 1, 1], [], []>} : vector<24x256xbf16>, vector<256x80xbf16>, vector<24x80xf32> -> vector<24x80xf32>
    %c0_19 = arith.constant 0 : index
    %c0_20 = arith.constant 0 : index
    %23 = vector.load %arg9[%c0_19, %c0_20] : memref<48x80xbf16, #tpu.memory_space<vmem>>, vector<48x80xbf16>
    %cst_21 = arith.constant dense<0.000000e+00> : vector<24x80xf32>
    %24 = tpu.matmul %4, %23, %cst_21 {dimension_numbers = #tpu.dot_dimension_numbers<[1], [0], [0], [1], [0, 0, 1, 1], [], []>} : vector<24x48xbf16>, vector<48x80xbf16>, vector<24x80xf32> -> vector<24x80xf32>
    %25 = arith.addf %22, %24 : vector<24x80xf32>
    %c0_22 = arith.constant 0 : index
    %c0_23 = arith.constant 0 : index
    %26 = vector.load %arg10[%c0_22, %c0_23] : memref<1x80xf32, #tpu.memory_space<vmem>>, vector<1x80xf32>
    %27 = vector.broadcast %26 : vector<1x80xf32> to vector<24x80xf32>
    %28 = arith.addf %25, %27 : vector<24x80xf32>
    %cst_24 = arith.constant 0.000000e+00 : f32
    %29 = vector.broadcast %cst_24 : f32 to vector<24x80xf32>
    %30 = arith.maximumf %28, %29 : vector<24x80xf32>
    %31 = arith.truncf %30 : vector<24x80xf32> to vector<24x80xbf16>
    %c0_25 = arith.constant 0 : index
    %c0_26 = arith.constant 0 : index
    %32 = vector.load %arg11[%c0_25, %c0_26] : memref<80x32xbf16, #tpu.memory_space<vmem>>, vector<80x32xbf16>
    %cst_27 = arith.constant dense<0.000000e+00> : vector<24x32xf32>
    %33 = tpu.matmul %31, %32, %cst_27 {dimension_numbers = #tpu.dot_dimension_numbers<[1], [0], [0], [1], [0, 0, 1, 1], [], []>} : vector<24x80xbf16>, vector<80x32xbf16>, vector<24x32xf32> -> vector<24x32xf32>
    %c0_28 = arith.constant 0 : index
    %c0_29 = arith.constant 0 : index
    %34 = vector.load %arg12[%c0_28, %c0_29] : memref<1x32xf32, #tpu.memory_space<vmem>>, vector<1x32xf32>
    %35 = vector.broadcast %34 : vector<1x32xf32> to vector<24x32xf32>
    %36 = arith.addf %33, %35 : vector<24x32xf32>
    %cst_30 = arith.constant 0.000000e+00 : f32
    %37 = vector.broadcast %cst_30 : f32 to vector<24x32xf32>
    %38 = arith.maximumf %36, %37 : vector<24x32xf32>
    %c0_31 = arith.constant 0 : index
    %c0_32 = arith.constant 0 : index
    %39 = vector.load %arg13[%c0_31, %c0_32] : memref<1x32xf32, #tpu.memory_space<vmem>>, vector<1x32xf32>
    %40 = vector.broadcast %39 : vector<1x32xf32> to vector<24x32xf32>
    %41 = arith.mulf %38, %40 : vector<24x32xf32>
    %cst_33 = arith.constant dense<0.000000e+00> : vector<24xf32>
    %42 = vector.multi_reduction <add>, %41, %cst_33 [1] : vector<24x32xf32> to vector<24xf32>
    %43 = vector.shape_cast %42 : vector<24xf32> to vector<24x1xf32>
    %c0_34 = arith.constant 0 : index
    %c0_35 = arith.constant 0 : index
    %44 = vector.load %arg14[%c0_34, %c0_35] : memref<1x8xf32, #tpu.memory_space<vmem>>, vector<1x8xf32>
    %45 = vector.broadcast %44 : vector<1x8xf32> to vector<24x8xf32>
    %46 = arith.mulf %0, %45 : vector<24x8xf32>
    %cst_36 = arith.constant dense<0.000000e+00> : vector<24xf32>
    %47 = vector.multi_reduction <add>, %46, %cst_36 [1] : vector<24x8xf32> to vector<24xf32>
    %48 = vector.shape_cast %47 : vector<24xf32> to vector<24x1xf32>
    %49 = arith.addf %43, %48 : vector<24x1xf32>
    %c0_37 = arith.constant 0 : index
    %c0_38 = arith.constant 0 : index
    %50 = vector.load %arg15[%c0_37, %c0_38] : memref<1x1xf32, #tpu.memory_space<vmem>>, vector<1x1xf32>
    %51 = vector.broadcast %50 : vector<1x1xf32> to vector<24x1xf32>
    %52 = arith.addf %49, %51 : vector<24x1xf32>
    %53 = arith.negf %52 : vector<24x1xf32>
    %54 = math.exp %53 : vector<24x1xf32>
    %cst_39 = arith.constant 1.000000e+00 : f32
    %55 = vector.broadcast %cst_39 : f32 to vector<24x1xf32>
    %56 = arith.addf %55, %54 : vector<24x1xf32>
    %57 = arith.divf %55, %56 : vector<24x1xf32>
    %c0_40 = arith.constant 0 : index
    %c0_41 = arith.constant 0 : index
    %58 = vector.load %arg16[%c0_40, %c0_41] : memref<24x1xf32, #tpu.memory_space<vmem>>, vector<24x1xf32>
    tpu.vector_store %arg16[%c0_40, %c0_41], %57 {strides = array<i32>} : memref<24x1xf32, #tpu.memory_space<vmem>>, vector<24x1xf32>,
    return
  }
  func.func @transform_0(%arg0: i32) -> (i32, i32) {
    %c0_i32 = arith.constant 0 : i32
    %c0_i32_0 = arith.constant 0 : i32
    return %arg0, %c0_i32 : i32, i32
  }
  func.func @transform_1(%arg0: i32) -> (i32, i32) {
    %c0_i32 = arith.constant 0 : i32
    %c0_i32_0 = arith.constant 0 : i32
    return %arg0, %c0_i32 : i32, i32
  }
  func.func @transform_2(%arg0: i32) -> (i32, i32) {
    %c0_i32 = arith.constant 0 : i32
    %c0_i32_0 = arith.constant 0 : i32
    return %arg0, %c0_i32 : i32, i32
  }
  func.func @transform_3(%arg0: i32) -> (i32, i32) {
    %c0_i32 = arith.constant 0 : i32
    %c0_i32_0 = arith.constant 0 : i32
    %c0_i32_1 = arith.constant 0 : i32
    return %c0_i32, %c0_i32_0 : i32, i32
  }
  func.func @transform_4(%arg0: i32) -> (i32, i32) {
    %c0_i32 = arith.constant 0 : i32
    %c0_i32_0 = arith.constant 0 : i32
    %c0_i32_1 = arith.constant 0 : i32
    return %c0_i32, %c0_i32_0 : i32, i32
  }
  func.func @transform_5(%arg0: i32) -> (i32, i32) {
    %c0_i32 = arith.constant 0 : i32
    %c0_i32_0 = arith.constant 0 : i32
    %c0_i32_1 = arith.constant 0 : i32
    return %c0_i32, %c0_i32_0 : i32, i32
  }
  func.func @transform_6(%arg0: i32) -> (i32, i32) {
    %c0_i32 = arith.constant 0 : i32
    %c0_i32_0 = arith.constant 0 : i32
    %c0_i32_1 = arith.constant 0 : i32
    return %c0_i32, %c0_i32_0 : i32, i32
  }
  func.func @transform_7(%arg0: i32) -> (i32, i32) {
    %c0_i32 = arith.constant 0 : i32
    %c0_i32_0 = arith.constant 0 : i32
    %c0_i32_1 = arith.constant 0 : i32
    return %c0_i32, %c0_i32_0 : i32, i32
  }
  func.func @transform_8(%arg0: i32) -> (i32, i32) {
    %c0_i32 = arith.constant 0 : i32
    %c0_i32_0 = arith.constant 0 : i32
    %c0_i32_1 = arith.constant 0 : i32
    return %c0_i32, %c0_i32_0 : i32, i32
  }
  func.func @transform_9(%arg0: i32) -> (i32, i32) {
    %c0_i32 = arith.constant 0 : i32
    %c0_i32_0 = arith.constant 0 : i32
    %c0_i32_1 = arith.constant 0 : i32
    return %c0_i32, %c0_i32_0 : i32, i32
  }
  func.func @transform_10(%arg0: i32) -> (i32, i32) {
    %c0_i32 = arith.constant 0 : i32
    %c0_i32_0 = arith.constant 0 : i32
    %c0_i32_1 = arith.constant 0 : i32
    return %c0_i32, %c0_i32_0 : i32, i32
  }
  func.func @transform_11(%arg0: i32) -> (i32, i32) {
    %c0_i32 = arith.constant 0 : i32
    %c0_i32_0 = arith.constant 0 : i32
    %c0_i32_1 = arith.constant 0 : i32
    return %c0_i32, %c0_i32_0 : i32, i32
  }
  func.func @transform_12(%arg0: i32) -> (i32, i32) {
    %c0_i32 = arith.constant 0 : i32
    %c0_i32_0 = arith.constant 0 : i32
    %c0_i32_1 = arith.constant 0 : i32
    return %c0_i32, %c0_i32_0 : i32, i32
  }
  func.func @transform_13(%arg0: i32) -> (i32, i32) {
    %c0_i32 = arith.constant 0 : i32
    %c0_i32_0 = arith.constant 0 : i32
    %c0_i32_1 = arith.constant 0 : i32
    return %c0_i32, %c0_i32_0 : i32, i32
  }
  func.func @transform_14(%arg0: i32) -> (i32, i32) {
    %c0_i32 = arith.constant 0 : i32
    %c0_i32_0 = arith.constant 0 : i32
    %c0_i32_1 = arith.constant 0 : i32
    return %c0_i32, %c0_i32_0 : i32, i32
  }
  func.func @transform_15(%arg0: i32) -> (i32, i32) {
    %c0_i32 = arith.constant 0 : i32
    %c0_i32_0 = arith.constant 0 : i32
    return %arg0, %c0_i32 : i32, i32
  }
}

</mosaic_0001>

<bundles_post_ra>
// kernel: tpu_custom_call.1
= control target key start
LH: loop header
LB: loop body
LE: loop exit
PB: predicated region body
PF: predicated region fallthrough
CT: control target
= control target key end

     0   :  { %s2744_s0 = inlined_call_operand.vmem [shape: f32[64,8], index: 0, kind: input, shape index: {}]   ;;  %s2745_s1 = inlined_call_operand.vmem [shape: f32[64,64], index: 1, kind: input, shape index: {}]   ;;  %s2746_s2 = inlined_call_operand.vmem [shape: f32[64,48], index: 2, kind: input, shape index: {}]   ;;  %s2747_s3 = inlined_call_operand.vmem [shape: bf16[64,256], index: 3, kind: input, shape index: {}]   ;;  %s2748_s4 = inlined_call_operand.vmem [shape: f32[1,256], index: 4, kind: input, shape index: {}]   ;;  %s2749_s5 = inlined_call_operand.vmem [shape: bf16[256,256], index: 5, kind: input, shape index: {}]   ;;  %s2750_s6 = inlined_call_operand.hbm [shape: f32[1,256], index: 6, kind: input, shape index: {}]   ;;  %s2751_s7 = inlined_call_operand.vmem [shape: bf16[256,80], index: 7, kind: input, shape index: {}]   ;;  %s2752_s8 = inlined_call_operand.hbm [shape: bf16[48,80], index: 8, kind: input, shape index: {}]   ;;  %s2753_s9 = inlined_call_operand.vmem [shape: f32[1,80], index: 9, kind: input, shape index: {}]   ;;  %s2754_s10 = inlined_call_operand.vmem [shape: bf16[80,32], index: 10, kind: input, shape index: {}]   ;;  %s2755_s11 = inlined_call_operand.vmem [shape: f32[1,32], index: 11, kind: input, shape index: {}]   ;;  %s2756_s12 = inlined_call_operand.vmem [shape: f32[1,32], index: 12, kind: input, shape index: {}]   ;;  %s2757_s13 = inlined_call_operand.vmem [shape: f32[1,8], index: 13, kind: input, shape index: {}]   ;;  %s2758_s14 = inlined_call_operand.<no memory space> [shape: f32[1,1], index: 14, kind: input, shape index: {}]   ;;  %s2759_s15 = inlined_call_operand.vmem [shape: f32[64,1], index: 15, kind: output, shape index: {}]  }
   0x1   :  { %v20_v0 = vstv %s2758_s14 }
   0x2   :  { %21 = vst [vmem:[#allocation2] sm:$0x1] %v20_v0 }
   0x3   :  { %22 = vsyncpa [#allocation4], 0 }
   0x4   :  { %23 = vsyncpa [#allocation6], 0  ;;  %s2378_s20 = smov 0   ;;  %s2380_s21 = smov 0  }
   0x5   :  { %s2382_s22 = smov 0  }
   0x6 LB: > { %2765 = sst [smem:[#allocation10_spill]] %s2252_s21  ;;  %s2391_s14 = sadd.s32 4294967295, %s2256_s22   ;;  %s2256_s22 = sphi %s2382_s22, %s2777_s22   ;;  %s2252_s21 = sphi %s2380_s21, %s2779_s21   ;;  %s2248_s20 = sphi %s2378_s20, %s2778_s20  }
   0x7   : > { %s2393_s23 = sadd.s32 1, %s2256_s22   ;;  %s366_s25 = sadd.s32 1, %s2252_s21 }
   0x8   : > { %2766 = sst [smem:[#allocation11_spill]] %s2393_s23  ;;  %s363_s24 = ssub.s32 %s2256_s22, %s2393_s23 }
   0x9   : > { %p364_p0 = scmp.eq.s32.totalorder %s363_s24, 0  ;;  %p376_p1 = scmp.ne.s32.totalorder %s2252_s21, %s2248_s20 }
   0xa   : > { %p377_p2 = scmp.eq.s32.totalorder %s2391_s14, 2  ;;  %p1759_p3 = scmp.ge.s32.totalorder %s2256_s22, 1 }
   0xb   : > { %s2401_s26 = scalar_select %p364_p0, %s2252_s21, %s366_s25  }
   0xc   : > { %p2403_p4 = por %p377_p2, %p376_p1  ;;  %p390_p5 = scmp.lt.s32.totalorder %s2256_s22, 4 }
   0xd   : > { %2767 = sst [smem:[#allocation12_spill]] %s2401_s26  ;;  %p2761_p6 = scmp.eq.s32.totalorder %s2391_s14, 0 }
   0xe   : > { %s2768_s27 = scalar_select %p2403_p4, 1, 0 }
   0xf   : > { %p2408_p7 = pnand %p1759_p3, %p390_p5  ;;  %s2290_s29 = smov [#allocation3]  }
  0x10   : > { %s412_s30 = sshll.u32 %s2290_s29, 4  ;;  %s2291_s16 = smov [#allocation5]   ;;  %s413_s30 = int_to_ptr.vmem [resolvable:$true] %s412_s30 }
  0x11   : > { %s2769_s28 = scalar_select %p2408_p7, 1, 0 }
  0x12   : > { %p1933_p8 = pneg %p2408_p7  ;;  %s425_s17 = sshll.u32 %s2291_s16, 4  ;;  %s2420_s17 = int_to_ptr.vmem [resolvable:$true] %s425_s17 }
  0x13   : > { %s2138_s24 = scalar_lea.hbm %s2750_s6, 32 }
  0x14   : > { %p2416_p9 = pnand %p2761_p6, %p1933_p8  ;;  %p2139_p10 = scmp.ne.s32.totalorder %s2750_s6, %s2138_s24 }
  0x15   : > { %p2145_p0 = scmp.lt.u32.totalorder %s2138_s24, %s2750_s6 }
  0x16   : > { %p2140_p11 = pneg %p2416_p9 }
  0x18   : > { %p2141_p12 = pnand %p2140_p11, %p2139_p10 }
  0x1a   : > { %p2142_p13 = pneg %p2141_p12 }
  0x1c   : > { %p2147_p1 = pnand %p2145_p0, %p2142_p13 }
  0x1e   : > { %2150 = shalt.err (!%p2147_p1)
}
  0x1f   : > { %s2151_s21 = scalar_lea.vmem %s413_s30, 32  ;;  %p2159_p8 = scmp.lt.s32.totalorder %s413_s30, %s413_s30 }
  0x20   : > { %p2152_p2 = scmp.ne.s32.totalorder %s413_s30, %s2151_s21  ;;  %p2160_p6 = scmp.lt.s32.totalorder %s2151_s21, %s2151_s21 }
  0x22   : > { %p2154_p3 = pnand %p2152_p2, %p2140_p11  ;;  %p2161_p4 = por %p2160_p6, %p2159_p8 }
  0x24   : > { %p2155_p5 = pneg %p2154_p3 }
  0x26   : > { %p2162_p7 = pnand %p2161_p4, %p2155_p5 }
  0x28   : > { %2165 = shalt.err (!%p2162_p7)
}
  0x29   : > { %1936 = dma.hbm_to_vmem [thread:$0]  (!%p2416_p9), %s2750_s6, 32, %s413_s30, [#allocation4]  }
  0x2a   : > { %s2166_s25 = scalar_lea.hbm %s2752_s8, 384 }
  0x2b   : > { %p2167_p10 = scmp.ne.s32.totalorder %s2752_s8, %s2166_s25  ;;  %p2173_p7 = scmp.lt.u32.totalorder %s2166_s25, %s2752_s8 }
  0x2d   : > { %p2169_p6 = pnand %p2167_p10, %p2140_p11 }
  0x2f   : > { %p2170_p4 = pneg %p2169_p6 }
  0x31   : > { %p2175_p12 = pnand %p2173_p7, %p2170_p4 }
  0x33   : > { %2178 = shalt.err (!%p2175_p12)
}
  0x34   : > { %s2179_s30 = scalar_lea.vmem %s2420_s17, 384  ;;  %p2187_p2 = scmp.lt.s32.totalorder %s2420_s17, %s2420_s17 }
  0x35   : > { %p2180_p13 = scmp.ne.s32.totalorder %s2420_s17, %s2179_s30  ;;  %p2188_p3 = scmp.lt.s32.totalorder %s2179_s30, %s2179_s30 }
  0x37   : > { %p2182_p0 = pnand %p2180_p13, %p2140_p11  ;;  %p2189_p5 = por %p2188_p3, %p2187_p2 }
  0x39   : > { %p2183_p1 = pneg %p2182_p0 }
  0x3b   : > { %p2190_p8 = pnand %p2189_p5, %p2183_p1 }
  0x3d   : > { %2193 = shalt.err (!%p2190_p8)
}
  0x3e   : > { %s2292_s23 = smov 64   ;;  %s2293_s19 = smov 4  }
  0x3f   : > { %1939 = dma.hbm_to_vmem [thread:$0]  (!%p2416_p9), %s2752_s8, 384, %s2420_s17, [#allocation6], %s2292_s23, %s2292_s23, %s2293_s19  }
  0x40   : > { %p2771_p10 = scmp.ne.s32.totalorder %s2769_s28, 0 }
  0x41   : > { %p2772_p11 = scmp.eq.s32.totalorder (!%p2771_p10), %s2391_s14, 0 }
  0x42   : > { %510 = sbr.rel (%p2771_p10) target bundleno = 1232 (0x4d0), region = 80 }
  0x49   : > { %2239 = dma.done.wait (%p2772_p11), [#allocation4], 32   ;;  %p2773_p6 = pmov %p2772_p11 }
  0x4b   : > { %2241 = vsyncadd (%p2773_p6), [#allocation4], 4294967264  ;;  %p2774_p4 = pmov %p2773_p6 }
  0x4d   : > { %2243 = dma.done.wait (%p2774_p4), [#allocation6], 384   ;;  %p2775_p7 = pmov %p2774_p4 }
  0x4e   : > { %s2480_s18 = smul.u32 3, %s2391_s14  ;;  %v2294_v1 = vmov 0   ;;  %v2038_v2 = vld [vmem:[%s2747_s3 + $0x4] ss:$8 sps:$4 sm:$0xff]   ;;  %v2040_v3 = vld [vmem:[%s2747_s3] ss:$8 sps:$4 sm:$0xff]   ;;  %v654_v58 = vlaneseq }
  0x4f   : > { %2245 = vsyncadd (%p2775_p7), [#allocation6], 4294966912  ;;  %743 = vmatprep.mubr.bf16.mxu0 %v2294_v1  ;;  %711 = vmatprep.subr.bf16.mxu0 %v2038_v2  ;;  %v2041_v4 = vld [vmem:[%s2747_s3 + $0x14] ss:$8 sps:$4 sm:$0xff]   ;;  %v2043_v5 = vld [vmem:[%s2747_s3 + $0x10] ss:$8 sps:$4 sm:$0xff]  }
  0x50   : > { %p588_p9 = scmp.lt.s32.totalorder %s2480_s18, 7  ;;  %712 = vmatpush1.bf16.msra.mxu0 %v2040_v3  ;;  %v2044_v6 = vld [vmem:[%s2747_s3 + $0x24] ss:$8 sps:$4 sm:$0xff]   ;;  %v2046_v7 = vld [vmem:[%s2747_s3 + $0x20] ss:$8 sps:$4 sm:$0xff]   ;;  %vm704_vm0 = vcmask 523264  }
  0x51   : > { %713 = vmatprep.subr.bf16.mxu0 %v2041_v4  ;;  %v2050_v8 = vld [vmem:[%s2749_s5 + $0x4] ss:$8 sps:$4 sm:$0xff]   ;;  %v2052_v9 = vld [vmem:[%s2749_s5] ss:$8 sps:$4 sm:$0xff]   ;;  %v2047_v10 = vld [vmem:[%s2747_s3 + $0x34] ss:$8 sps:$4 sm:$0xff]  }
  0x52   : > { %s589_s28 = scalar_select %p588_p9, %s2480_s18, 7  ;;  %v2053_v11 = vld [vmem:[%s2749_s5 + $0x14] ss:$8 sps:$4 sm:$0xff]   ;;  %v2049_v12 = vld [vmem:[%s2747_s3 + $0x30] ss:$8 sps:$4 sm:$0xff]   ;;  %976 = vmatprep.subr.bf16.mxu1 %v2050_v8  ;;  %v2098_v47 = vld [vmem:[%s2751_s7 + $0x40] sm:$0xff]  }
  0x53   : > { %977 = vmatpush1.bf16.msra.mxu1 %v2052_v9  ;;  %v2055_v14 = vld [vmem:[%s2749_s5 + $0x10] ss:$8 sps:$4 sm:$0xff]   ;;  %v2056_v16 = vld [vmem:[%s2749_s5 + $0x24] ss:$8 sps:$4 sm:$0xff]   ;;  %v2058_v18 = vld [vmem:[%s2749_s5 + $0x20] ss:$8 sps:$4 sm:$0xff]  }
  0x54   : > { %s2496_s19 = sshll.u32 %s589_s28, 3  ;;  %714 = vmatpush1.bf16.msra.mxu0 %v2043_v5  ;;  %978 = vmatprep.subr.bf16.mxu1 %v2053_v11  ;;  %v2059_v19 = vld [vmem:[%s2749_s5 + $0x34] ss:$8 sps:$4 sm:$0xff]   ;;  %v2061_v20 = vld [vmem:[%s2749_s5 + $0x30] ss:$8 sps:$4 sm:$0xff]   ;;  %v2099_v48 = vld [vmem:[%s2751_s7] sm:$0xff]  }
  0x55   : > { %s605_s16 = scalar_lea.vmem %s2745_s1, %s2496_s19  ;;  %715 = vmatprep.subr.bf16.mxu0 %v2044_v6  ;;  %v2062_v22 = vld [vmem:[%s2749_s5 + $0x44] ss:$8 sps:$4 sm:$0xff]   ;;  %v2064_v24 = vld [vmem:[%s2749_s5 + $0x40] ss:$8 sps:$4 sm:$0xff]   ;;  %v2065_v25 = vld [vmem:[%s2749_s5 + $0x54] ss:$8 sps:$4 sm:$0xff]   ;;  %s619_s24 = scalar_lea.vmem %s2746_s2, %s2496_s19 }
  0x56   : > { %v634_v13 = vld [vmem:[%s605_s16] sm:$0xff]  ;;  %v635_v15 = vld [vmem:[%s605_s16 + $0x8] sm:$0xff]  ;;  %v636_v21 = vld [vmem:[%s605_s16 + $0x10] sm:$0xff]  ;;  %v2645_v59 = vshrl.u32 %v654_v58, 7  ;;  %vm1093_vm1 = vcmask 392192   ;;  %vm1354_vm2 = vcmask 654336   ;;  %s591_s21 = scalar_lea.vmem %s2744_s0, %s2496_s19 }
  0x57   : > { %v637_v17 = vpack.c.bf16 %v635_v15, %v634_v13  ;;  %979 = vmatpush1.bf16.msra.mxu1 %v2055_v14  ;;  %v638_v23 = vpack.c.bf16 %v636_v21, %v636_v21  ;;  %v2067_v26 = vld [vmem:[%s2749_s5 + $0x50] ss:$8 sps:$4 sm:$0xff]   ;;  %v2068_v27 = vld [vmem:[%s2749_s5 + $0x64] ss:$8 sps:$4 sm:$0xff]   ;;  %v2070_v28 = vld [vmem:[%s2749_s5 + $0x60] ss:$8 sps:$4 sm:$0xff]  }
  0x58   : > { %716 = vmatpush1.bf16.msra.mxu0 %v2046_v7  ;;  %980 = vmatprep.subr.bf16.mxu1 %v2056_v16  ;;  %v2071_v29 = vld [vmem:[%s2749_s5 + $0x74] ss:$8 sps:$4 sm:$0xff]   ;;  %v2073_v30 = vld [vmem:[%s2749_s5 + $0x70] ss:$8 sps:$4 sm:$0xff]   ;;  %v2074_v31 = vld [vmem:[%s2749_s5 + $0x84] ss:$8 sps:$4 sm:$0xff]  }
  0x59   : > { %717 = vmatprep.subr.bf16.mxu0 %v2047_v10  ;;  %v2076_v32 = vld [vmem:[%s2749_s5 + $0x80] ss:$8 sps:$4 sm:$0xff]   ;;  %v2077_v33 = vld [vmem:[%s2749_s5 + $0x94] ss:$8 sps:$4 sm:$0xff]   ;;  %v2079_v34 = vld [vmem:[%s2749_s5 + $0x90] ss:$8 sps:$4 sm:$0xff]  }
  0x5a   : > { %v2080_v35 = vld [vmem:[%s2749_s5 + $0xa4] ss:$8 sps:$4 sm:$0xff]   ;;  %v2082_v36 = vld [vmem:[%s2749_s5 + $0xa0] ss:$8 sps:$4 sm:$0xff]   ;;  %v2083_v37 = vld [vmem:[%s2749_s5 + $0xb4] ss:$8 sps:$4 sm:$0xff]  }
  0x5b   : > { %981 = vmatpush1.bf16.msra.mxu1 %v2058_v18  ;;  %v2085_v38 = vld [vmem:[%s2749_s5 + $0xb0] ss:$8 sps:$4 sm:$0xff]   ;;  %v2086_v39 = vld [vmem:[%s2749_s5 + $0xc4] ss:$8 sps:$4 sm:$0xff]   ;;  %v2088_v40 = vld [vmem:[%s2749_s5 + $0xc0] ss:$8 sps:$4 sm:$0xff]  }
  0x5c   : > { %718 = vmatpush1.bf16.msra.mxu0 %v2049_v12  ;;  %982 = vmatprep.subr.bf16.mxu1 %v2059_v19  ;;  %v2089_v41 = vld [vmem:[%s2749_s5 + $0xd4] ss:$8 sps:$4 sm:$0xff]   ;;  %v2091_v42 = vld [vmem:[%s2749_s5 + $0xd0] ss:$8 sps:$4 sm:$0xff]   ;;  %v2092_v43 = vld [vmem:[%s2749_s5 + $0xe4] ss:$8 sps:$4 sm:$0xff]  }
  0x5d   : > { %v2094_v44 = vld [vmem:[%s2749_s5 + $0xe0] ss:$8 sps:$4 sm:$0xff]   ;;  %v2095_v45 = vld [vmem:[%s2749_s5 + $0xf4] ss:$8 sps:$4 sm:$0xff]   ;;  %v2097_v46 = vld [vmem:[%s2749_s5 + $0xf0] ss:$8 sps:$4 sm:$0xff]   ;;  %1865 = vmatprep.subr.bf16.mxu0 %v2098_v47 }
  0x5e   : > { %v2100_v49 = vld [vmem:[%s2751_s7 + $0x48] sm:$0xff]   ;;  %v2102_v51 = vld [vmem:[%s2751_s7 + $0x50] sm:$0xff]   ;;  %v2104_v53 = vld [vmem:[%s2751_s7 + $0x58] sm:$0xff]   ;;  %v656_v60 = vsub.s32 0, %v2645_v59  ;;  %v660_v62 = vsub.s32 1, %v2645_v59  ;;  %vm1442_vm3 = vcmask 64512  }
  0x5f   : > { %1777 = vmatmul.mubr.msk.bf16.vlgmr.msra.gmra.mrb[0].mxu0 %vm704_vm0, %v637_v17  ;;  %983 = vmatpush1.bf16.msra.mxu1 %v2061_v20  ;;  %v2101_v50 = vld [vmem:[%s2751_s7 + $0x8] sm:$0xff]   ;;  %v2103_v52 = vld [vmem:[%s2751_s7 + $0x10] sm:$0xff]   ;;  %v2105_v54 = vld [vmem:[%s2751_s7 + $0x18] sm:$0xff]   ;;  %vm1422_vm4 = vcmask 261120   ;;  %s580_s17 = sand.u32 1, %s2248_s20   ;;  %vm1483_vm5 = vcmask 7168  }
  0x60   : > { %753 = vmatprep.mubr.bf16.mxu0 %v2294_v1  ;;  %984 = vmatprep.subr.bf16.mxu1 %v2062_v22  ;;  %v2106_v55 = vld [vmem:[%s2751_s7 + $0x60] sm:$0xff]   ;;  %v2108_v57 = vld [vmem:[%s2751_s7 + $0x68] sm:$0xff]   ;;  %p2776_p12 = scmp.ne.s32.totalorder %s2768_s27, 0 }
  0x61   : > { %1866 = vmatpush3.bf16.msra.mxu0 %v2099_v48  ;;  %v2107_v56 = vld [vmem:[%s2751_s7 + $0x20] sm:$0xff]   ;;  %s1495_s20 = ssub.s32 (%p2776_p12), 8, %s2480_s18  ;;  %s1859_s25 = smul.u32 (%p2776_p12), 24, %s2391_s14 }
  0x62   : > { %1867 = vmatprep.subr.bf16.mxu0 %v2100_v49  ;;  %v652_v61 = vld [vmem:[%s2748_s4] sm:$0x3]  ;;  %p1496_p13 = scmp.lt.s32.totalorder (%p2776_p12), %s1495_s20, 3 }
  0x63   : > { %985 = vmatpush1.bf16.msra.mxu1 %v2064_v24  ;;  %v657_v63 = vrot.slane %v652_v61, %v656_v60  ;;  %v661_v0 = vrot.slane %v652_v61, %v660_v62  ;;  %s2715_s30 = scalar_lea.vmem (%p2776_p12), %s2759_s15, %s1859_s25  }
  0x64   : > { %986 = vmatprep.subr.bf16.mxu1 %v2065_v25  ;;  %v2109_v25 = vld [vmem:[%s2751_s7 + $0x28] sm:$0xff]  }
  0x65   : > { %1868 = vmatpush3.bf16.msra.mxu0 %v2101_v50 }
  0x66   : > { %1869 = vmatprep.subr.bf16.mxu0 %v2102_v51 }
  0x67   : > { %1778 = vmatmul.mubr.msk.bf16.gmra.mrb[4].mxu0 %vm704_vm0, %v638_v23  ;;  %987 = vmatpush1.bf16.msra.mxu1 %v2067_v26  ;;  %v2110_v26 = vld [vmem:[#allocation5] sm:$0xff]  }
  0x68   : > { %988 = vmatprep.subr.bf16.mxu1 %v2068_v27  ;;  %v2111_v27 = vld [vmem:[%s2751_s7 + $0x70] sm:$0xff]  }
  0x69   : > { %1870 = vmatpush3.bf16.msra.mxu0 %v2103_v52 }
  0x6a   : > { %1871 = vmatprep.subr.bf16.mxu0 %v2104_v53 }
  0x6b   : > { %989 = vmatpush1.bf16.msra.mxu1 %v2070_v28  ;;  %v2112_v28 = vld [vmem:[%s2751_s7 + $0x30] sm:$0xff]  }
  0x6c   : > { %990 = vmatprep.subr.bf16.mxu1 %v2071_v29  ;;  %v2113_v29 = vld [vmem:[#allocation5 + $0x8] sm:$0xff]  }
  0x6d   : > { %1872 = vmatpush3.bf16.msra.mxu0 %v2105_v54 }
  0x6e   : > { %1873 = vmatprep.subr.bf16.mxu0 %v2106_v55 }
  0x6f   : > { %991 = vmatpush1.bf16.msra.mxu1 %v2073_v30  ;;  %v2114_v30 = vld [vmem:[%s2751_s7 + $0x78] sm:$0xff]  }
  0x70   : > { %992 = vmatprep.subr.bf16.mxu1 %v2074_v31  ;;  %v2115_v31 = vld [vmem:[%s2751_s7 + $0x38] sm:$0xff]  }
  0x71   : > { %1874 = vmatpush3.bf16.msra.mxu0 %v2107_v56 }
  0x72   : > { %1875 = vmatprep.subr.bf16.mxu0 %v2108_v57 }
  0x73   : > { %993 = vmatpush1.bf16.msra.mxu1 %v2076_v32  ;;  %v2116_v32 = vld [vmem:[#allocation5 + $0x10] sm:$0xff]  }
  0x74   : > { %994 = vmatprep.subr.bf16.mxu1 %v2077_v33  ;;  %v639_v33 = vld [vmem:[%s619_s24] sm:$0xff] }
  0x75   : > { %1876 = vmatpush3.bf16.msra.mxu0 %v2109_v25 }
  0x76   : > { %1877 = vmatprep.subr.bf16.mxu0 %v2111_v27 }
  0x77   : > { %995 = vmatpush1.bf16.msra.mxu1 %v2079_v34  ;;  %v640_v34 = vld [vmem:[%s619_s24 + $0x8] sm:$0xff] }
  0x78   : > { %996 = vmatprep.subr.bf16.mxu1 %v2080_v35  ;;  %v641_v35 = vld [vmem:[%s619_s24 + $0x10] sm:$0xff]  ;;  %s1924_s24 = smul.u32 24, %s580_s17 }
  0x79   : > { %1878 = vmatpush3.bf16.msra.mxu0 %v2112_v28 }
  0x7a   : > { %1879 = vmatprep.subr.bf16.mxu0 %v2114_v30  ;;  %s2703_s16 = scalar_lea.vmem [#allocation7], %s1924_s24  }
  0x7b   : > { %997 = vmatpush1.bf16.msra.mxu1 %v2082_v36  ;;  %v642_v36 = vpack.c.bf16 %v640_v34, %v639_v33  ;;  %v631_v33 = vld [vmem:[%s591_s21] sm:$0xff] }
  0x7c   : > { %998 = vmatprep.subr.bf16.mxu1 %v2083_v37  ;;  %v643_v37 = vpack.c.bf16 %v641_v35, %v641_v35  ;;  %v1842_v34 = vld [vmem:[%s2757_s13] ss:$0 sm:$0xff] }
  0x7d   : > { %1880 = vmatpush3.bf16.msra.mxu0 %v2115_v31  ;;  %v1439_v35 = vmul.f32 %v1842_v34, %v631_v33 }
  0x7f   : > { %999 = vmatpush1.bf16.msra.mxu1 %v2085_v38  ;;  %v804_v38 = vld [vmem:[#allocation3] sm:$0x3] }
  0x80   : > { %1000 = vmatprep.subr.bf16.mxu1 %v2086_v39  ;;  %v809_v39 = vrot.slane %v804_v38, %v656_v60 }
  0x83   : > { %1001 = vmatpush1.bf16.msra.mxu1 %v2088_v40  ;;  %v813_v40 = vrot.slane %v804_v38, %v660_v62 }
  0x84   : > { %1002 = vmatprep.subr.bf16.mxu1 %v2089_v41 }
  0x87   : > { %1003 = vmatpush1.bf16.msra.mxu1 %v2091_v42 }
  0x88   : > { %1004 = vmatprep.subr.bf16.mxu1 %v2092_v43 }
  0x8b   : > { %1005 = vmatpush1.bf16.msra.mxu1 %v2094_v44 }
  0x8c   : > { %1006 = vmatprep.subr.bf16.mxu1 %v2095_v45 }
  0x8f   : > { %1007 = vmatpush1.bf16.msra.mxu1 %v2097_v46 }
  0x90   : > { %1900 = vmatprep.subr.bf16.mxu1 %v2110_v26 }
 0x132   : > { %v745_v1 = vpop.f32.mrb[0].mxu0 }
 0x133   : > { %v746_v2 = vadd.f32 %v745_v1, %v657_v63  ;;  %v747_v3 = vpop.f32.mrb[1].mxu0  ;;  %v2117_v1 = vld [vmem:[%s2754_s10] sm:$0xff]  }
 0x134   : > { %v748_v4 = vadd.f32 %v747_v3, %v661_v0  ;;  %v749_v5 = vpop.f32.mrb[2].mxu0  ;;  %1910 = vmatprep.subr.bf16.mxu0 %v2117_v1  ;;  %v2118_v3 = vld [vmem:[%s2754_s10 + $0x8] sm:$0xff]  }
 0x135   : > { %v750_v6 = vadd.f32 %v749_v5, %v657_v63  ;;  %v751_v7 = vpop.f32.mrb[3].mxu0  ;;  %v762_v9 = vmax.f32 %v746_v2, 0.0 }
 0x136   : > { %v752_v8 = vadd.f32 %v751_v7, %v661_v0  ;;  %v763_v11 = vmax.f32 %v748_v4, 0.0  ;;  %v2119_v7 = vld [vmem:[%s2754_s10 + $0x10] sm:$0xff]  }
 0x137   : > { %v764_v10 = vmax.f32 %v750_v6, 0.0 }
 0x138   : > { %v765_v12 = vmax.f32 %v752_v8, 0.0  ;;  %v2120_v8 = vld [vmem:[%s2754_s10 + $0x18] sm:$0xff]  }
 0x139   : > { %v768_v13 = vpack.c.bf16 %v764_v10, %v762_v9  ;;  %v2121_v9 = vld [vmem:[%s2754_s10 + $0x20] sm:$0xff]  }
 0x13a   : > { %v755_v14 = vpop.f32.mrb[4].mxu0  ;;  %v769_v15 = vpack.c.bf16 %v765_v12, %v763_v11 }
 0x13b   : > { %v756_v16 = vadd.f32 %v755_v14, %v657_v63  ;;  %v757_v17 = vpop.f32.mrb[5].mxu0  ;;  %v1832_v14 = vld [vmem:[%s2753_s9] ss:$0 sm:$0xff] }
 0x13c   : > { %v758_v18 = vadd.f32 %v757_v17, %v661_v0  ;;  %1008 = vmatprep.mubr.bf16.mxu1 %v769_v15  ;;  %v759_v19 = vpop.f32.mrb[6].mxu0 }
 0x13d   : > { %v766_v20 = vmax.f32 %v756_v16, 0.0  ;;  %1009 = vmatmul.mubr.bf16.vlgmr.msra.gmra.mrb[0].mxu1 %v768_v13  ;;  %v760_v21 = vpop.f32.mrb[7].mxu0 }
 0x13e   : > { %v767_v22 = vmax.f32 %v758_v18, 0.0  ;;  %1901 = vmatpush3.bf16.msra.mxu1 %v2110_v26 }
 0x13f   : > { %v770_v24 = vpack.c.bf16 %v766_v20, %v766_v20  ;;  %1902 = vmatprep.subr.bf16.mxu1 %v2113_v29 }
 0x140   : > { %v771_v23 = vpack.c.bf16 %v767_v22, %v767_v22 }
 0x142   : > { %1018 = vmatprep.mubr.bf16.mxu1 %v771_v23  ;;  %1903 = vmatpush3.bf16.msra.mxu1 %v2113_v29 }
 0x143   : > { %1904 = vmatprep.subr.bf16.mxu1 %v2116_v32 }
 0x145   : > { %1019 = vmatmul.mubr.bf16.gmra.mrb[4].mxu1 %v770_v24 }
 0x146   : > { %1905 = vmatpush3.bf16.msra.mxu1 %v2116_v32  ;;  %1906 = vmatprep.mubr.msk.bf16.mxu1 %vm1093_vm1, %v642_v36  ;;  %v1443_v36 = vsel %vm1442_vm3, %v1439_v35, 0.0 }
 0x147   : > { %1444 = vadd.xlane.f32.xlu1 %v1443_v36 }
 0x14d   : > { %1907 = vmatmul.mubr.msk.bf16.vlgmr.msra.gmra.mrb[8].mxu1 %vm1093_vm1, %v643_v37  ;;  %v633_v37 = vld [vmem:[%s591_s21 + $0x10] sm:$0xff] }
 0x14e   : > { %v1441_v38 = vmul.f32 %v1842_v34, %v633_v37 }
 0x210   : > { %v1010_v41 = vpop.f32.mrb[0].mxu1 }
 0x211   : > { %v1011_v42 = vadd.f32 %v1010_v41, %v809_v39  ;;  %v1012_v43 = vpop.f32.mrb[1].mxu1 }
 0x212   : > { %v1013_v44 = vadd.f32 %v1012_v43, %v813_v40  ;;  %v1014_v45 = vpop.f32.mrb[2].mxu1  ;;  %v1833_v43 = vld [vmem:[%s2755_s11] ss:$0 sm:$0xff] }
 0x213   : > { %v1015_v46 = vadd.f32 %v1014_v45, %v809_v39  ;;  %v1016_v47 = vpop.f32.mrb[3].mxu1  ;;  %v1027_v49 = vmax.f32 %v1011_v42, 0.0 }
 0x214   : > { %v1017_v48 = vadd.f32 %v1016_v47, %v813_v40  ;;  %v1028_v51 = vmax.f32 %v1013_v44, 0.0 }
 0x215   : > { %v1029_v50 = vmax.f32 %v1015_v46, 0.0 }
 0x216   : > { %v1030_v52 = vmax.f32 %v1017_v48, 0.0 }
 0x217   : > { %v1033_v53 = vpack.c.bf16 %v1029_v50, %v1027_v49  ;;  %v1841_v49 = vld [vmem:[%s2756_s12] ss:$0 sm:$0xff] }
 0x218   : > { %v1034_v54 = vpack.c.bf16 %v1030_v52, %v1028_v51  ;;  %v1020_v55 = vpop.f32.mrb[4].mxu1 }
 0x219   : > { %v1021_v56 = vadd.f32 %v1020_v55, %v809_v39  ;;  %v1022_v57 = vpop.f32.mrb[5].mxu1  ;;  %v1449_v39 = vsel %vm1442_vm3, %v1441_v38, 0.0 }
 0x21a   : > { %v1023_v58 = vadd.f32 %v1022_v57, %v813_v40  ;;  %v1024_v59 = vpop.f32.mrb[6].mxu1  ;;  %1276 = vmatprep.mubr.bf16.mxu0 %v1034_v54  ;;  %v632_v40 = vld [vmem:[%s591_s21 + $0x8] sm:$0xff] }
 0x21b   : > { %v1025_v60 = vpop.f32.mrb[7].mxu1  ;;  %1277 = vmatmul.mubr.bf16.vlgmr.msra.gmra.mrb[8].mxu0 %v1033_v53  ;;  %v1031_v62 = vmax.f32 %v1021_v56, 0.0  ;;  %v1440_v41 = vmul.f32 %v1842_v34, %v632_v40 }
 0x21c   : > { %v1032_v61 = vmax.f32 %v1023_v58, 0.0  ;;  %1911 = vmatpush3.bf16.msra.mxu0 %v2117_v1 }
 0x21d   : > { %v1035_v0 = vpack.c.bf16 %v1031_v62, %v1031_v62  ;;  %1912 = vmatprep.subr.bf16.mxu0 %v2118_v3  ;;  %v1446_v42 = vsel %vm1442_vm3, %v1440_v41, 0.0 }
 0x21e   : > { %v1036_v63 = vpack.c.bf16 %v1032_v61, %v1032_v61  ;;  %v1445_v61 = vpop.xlane.xlu1 %1444 }
 0x220   : > { %1284 = vmatprep.mubr.bf16.mxu0 %v1036_v63  ;;  %v1908_v2 = vpop.f32.mrb[8].mxu1  ;;  %1913 = vmatpush3.bf16.msra.mxu0 %v2118_v3  ;;  %v1843_v63 = vld [vmem:[#allocation2] ss:$0 sm:$0xff] }
 0x221   : > { %v1134_v4 = vpop.f32.mrb[9].mxu1  ;;  %1914 = vmatprep.subr.bf16.mxu0 %v2119_v7 }
 0x222   : > { %v1909_v5 = vpop.f32.mrb[10].mxu1 }
 0x223   : > { %1285 = vmatmul.mubr.bf16.gmra.mrb[12].mxu0 %v1035_v0  ;;  %v1137_v6 = vpop.f32.mrb[11].mxu1 }
 0x224   : > { %1915 = vmatpush3.bf16.msra.mxu0 %v2119_v7 }
 0x225   : > { %1916 = vmatprep.subr.bf16.mxu0 %v2120_v8 }
 0x228   : > { %1917 = vmatpush3.bf16.msra.mxu0 %v2120_v8 }
 0x229   : > { %1918 = vmatprep.subr.bf16.mxu0 %v2121_v9 }
 0x22c   : > { %1919 = vmatpush3.bf16.msra.mxu0 %v2121_v9 }
 0x2ee   : > { %v1881_v10 = vpop.f32.mrb[8].mxu0 }
 0x2ef   : > { %v1882_v11 = vpop.f32.mrb[9].mxu0 }
 0x2f0   : > { %v1883_v12 = vadd.f32 %v1882_v11, %v1881_v10  ;;  %v1884_v13 = vpop.f32.mrb[10].mxu0 }
 0x2f1   : > { %v1885_v15 = vpop.f32.mrb[11].mxu0 }
 0x2f2   : > { %v1279_v16 = vadd.f32 %v1883_v12, %v1134_v4  ;;  %v1886_v17 = vadd.f32 %v1885_v15, %v1884_v13 }
 0x2f4   : > { %v1299_v18 = vadd.f32 %v1832_v14, %v1279_v16  ;;  %v1282_v19 = vadd.f32 %v1886_v17, %v1137_v6 }
 0x2f6   : > { %v1300_v20 = vadd.f32 %v1832_v14, %v1282_v19  ;;  %v1887_v21 = vpop.f32.mrb[12].mxu0  ;;  %v1302_v23 = vmax.f32 %v1299_v18, 0.0 }
 0x2f7   : > { %v1888_v22 = vpop.f32.mrb[13].mxu0 }
 0x2f8   : > { %v1303_v24 = vmax.f32 %v1300_v20, 0.0  ;;  %v1889_v25 = vadd.f32 %v1888_v22, %v1887_v21  ;;  %v1890_v26 = vpop.f32.mrb[14].mxu0 }
 0x2f9   : > { %v1891_v27 = vpop.f32.mrb[15].mxu0 }
 0x2fa   : > { %v1305_v28 = vpack.c.bf16 %v1303_v24, %v1302_v23  ;;  %v1287_v29 = vadd.f32 %v1908_v2, %v1889_v25 }
 0x2fc   : > { %v1301_v30 = vadd.f32 %v1832_v14, %v1287_v29  ;;  %1920 = vmatprep.mubr.msk.bf16.mxu0 %vm1354_vm2, %v1305_v28 }
 0x2fe   : > { %v1304_v31 = vmax.f32 %v1301_v30, 0.0 }
 0x300   : > { %v1306_v32 = vpack.c.bf16 %v1304_v31, %v1304_v31 }
 0x302   : > { %1921 = vmatmul.mubr.msk.bf16.vlgmr.msra.gmra.mrb[16].mxu0 %vm1354_vm2, %v1306_v32 }
 0x3d5   : > { %v1922_v44 = vpop.f32.mrb[16].mxu0 }
 0x3d6   : > { %v1404_v45 = vadd.f32 %v1922_v44, %v1833_v43  ;;  %v1395_v46 = vpop.f32.mrb[17].mxu0 }
 0x3d7   : > { %v1396_v47 = vadd.f32 %v1833_v43, %v1395_v46  ;;  %v1923_v48 = vpop.f32.mrb[18].mxu0 }
 0x3d8   : > { %v1411_v50 = vmax.f32 %v1404_v45, 0.0  ;;  %v1398_v51 = vpop.f32.mrb[19].mxu0 }
 0x3d9   : > { %v1409_v52 = vmax.f32 %v1396_v47, 0.0  ;;  %v1399_v53 = vadd.f32 %v1833_v43, %v1398_v51 }
 0x3da   : > { %v1421_v54 = vmul.f32 %v1841_v49, %v1411_v50 }
 0x3db   : > { %v1410_v55 = vmax.f32 %v1399_v53, 0.0  ;;  %v1419_v56 = vmul.f32 %v1841_v49, %v1409_v52 }
 0x3dc   : > { %v1429_v57 = vsel %vm1422_vm4, %v1421_v54, 0.0 }
 0x3dd   : > { %1430 = vadd.xlane.f32.xlu1 %v1429_v57  ;;  %v1423_v58 = vsel %vm1422_vm4, %v1419_v56, 0.0  ;;  %v1420_v59 = vmul.f32 %v1841_v49, %v1410_v55 }
 0x3de   : > { %1424 = vadd.xlane.f32.xlu0 %v1423_v58 }
 0x3df   : > { %v1426_v60 = vsel %vm1422_vm4, %v1420_v59, 0.0 }
 0x3e1   : > { %1450 = vadd.xlane.f32.xlu1 %v1449_v39 }
 0x3e2   : > { %1427 = vadd.xlane.f32.xlu0 %v1426_v60 }
 0x3e6   : > { %1447 = vadd.xlane.f32.xlu0 %v1446_v42 }
 0x46a   : > { %v1431_v62 = vpop.xlane.xlu1 %1430 }
 0x46b   : > { %v1425_v0 = vpop.xlane.xlu0 %1424 }
 0x46c   : > { %v1452_v1 = vadd.f32 %v1445_v61, %v1425_v0 }
 0x46e   : > { %v1462_v2 = vadd.f32 %v1843_v63, %v1452_v1  ;;  %v1451_v3 = vpop.xlane.xlu1 %1450 }
 0x46f   : > { %v1454_v4 = vadd.f32 %v1451_v3, %v1431_v62  ;;  %v1428_v5 = vpop.xlane.xlu0 %1427 }
 0x470   : > { %v1844_v6 = vmul.f32 -1.442695, %v1462_v2 }
 0x471   : > { %v1464_v7 = vadd.f32 %v1843_v63, %v1454_v4 }
 0x472   : > { %2122 = vpow2.f32 %v1844_v6 }
 0x473   : > { %v1846_v8 = vmul.f32 -1.442695, %v1464_v7  ;;  %v1448_v9 = vpop.xlane.xlu0 %1447 }
 0x474   : > { %v1453_v10 = vadd.f32 %v1448_v9, %v1428_v5 }
 0x475   : > { %2124 = vpow2.f32 %v1846_v8 }
 0x476   : > { %v1463_v11 = vadd.f32 %v1843_v63, %v1453_v10 }
 0x478   : > { %v1845_v12 = vmul.f32 -1.442695, %v1463_v11 }
 0x47a   : > { %2126 = vpow2.f32 %v1845_v12 }
 0x47c   : > { %v2123_v13 = vpop.eup %2122 }
 0x47d   : > { %v1474_v14 = vadd.f32 1.0, %v2123_v13 }
 0x47f   : > { %v2125_v15 = vpop.eup %2124  ;;  %2128 = vrcp.f32 %v1474_v14 }
 0x480   : > { %v1476_v16 = vadd.f32 1.0, %v2125_v15 }
 0x482   : > { %2130 = vrcp.f32 %v1476_v16 }
 0x484   : > { %v2127_v17 = vpop.eup %2126 }
 0x485   : > { %v1475_v18 = vadd.f32 1.0, %v2127_v17 }
 0x487   : > { %2132 = vrcp.f32 %v1475_v18 }
 0x489   : > { %v2129_v19 = vpop.eup %2128 }
 0x48a   : > { %1484 = vst.msk [vmem:[%s2703_s16] sm:$0xff] %vm1483_vm5, %v2129_v19 }
 0x48c   : > { %v2131_v20 = vpop.eup %2130  ;;  %1493 = sbr.rel (!%p2776_p12) target bundleno = 1232 (0x4d0), region = 92 }
 0x48d   : > { %1486 = vst.msk [vmem:[%s2703_s16 + $0x10] sm:$0xff] %vm1483_vm5, %v2131_v20 }
 0x491   : > { %v2133_v21 = vpop.eup %2132 }
 0x492   : > { %1485 = vst.msk [vmem:[%s2703_s16 + $0x8] sm:$0xff] %vm1483_vm5, %v2133_v21 }
 0x493   : > { %s2781_s20 = smov (!%p1496_p13, %s1495_s20), 3 }
 0x494   : > { %s1847_s28 = sshll.u32 %s2781_s20, 7 }
 0x495   : > { %p1850_p0 = scmp.eq.s32.totalorder %s1847_s28, 0 }
 0x496   : > { %2134 = sdivrem.u32 (!%p1850_p0), %s2781_s20, 3 }
 0x497   : > { %1504 = sbr.rel (%p1850_p0) target bundleno = 1232 (0x4d0), region = 96 }
 0x49f   : > { %s2721_s27 = spop.drf %2134 }
 0x4a0   : > { %p1851_p1 = scmp.le.s32.totalorder %s2721_s27, 0 }
 0x4a1   : > { %s2258_s14 = smov (!%p1851_p1), %s2715_s30   ;;  %s2262_s18 = smov (!%p1851_p1), %s2703_s16  }
 0x4a2   : > { %1684 = sbr.rel (%p1851_p1) target bundleno = 1203 (0x4b3), region = 179  ;;  %s2266_s23 = smov (!%p1851_p1), 0  }
 0x4a3   : > { %s2270_s22 = smov (!%p1851_p1), 0  }
 0x4a9 LB: >> { %v1572_v22 = vld [vmem:[%s2264_s18] sm:$0xff]  ;;  %v1574_v23 = vld [vmem:[%s2264_s18 + $0x8] sm:$0xff]  ;;  %v1576_v24 = vld [vmem:[%s2264_s18 + $0x10] sm:$0xff]  ;;  %s1578_s19 = sadd.s32 1, %s2268_s23  ;;  %s1566_s22 = sadd.s32 1, %s2272_s22   ;;  %s2272_s22 = sphi %s2270_s22, %s1566_s22   ;;  %s2268_s23 = sphi %s2266_s23, %s2267_s23   ;;  %s2264_s18 = sphi %s2262_s18, %s1583_s18   ;;  %s2260_s14 = sphi %s2258_s14, %s1584_s14  }
 0x4aa   : >> { %1573 = vst [vmem:[%s2260_s14] sm:$0xff] %v1572_v22  ;;  %1575 = vst [vmem:[%s2260_s14 + $0x8] sm:$0xff] %v1574_v23  ;;  %p1579_p2 = scmp.ge.s32.totalorder %s1578_s19, %s2721_s27  ;;  %p1565_p3 = scmp.ge.s32.totalorder %s1566_s22, %s2721_s27 }
 0x4ab   : >> { %1577 = vst [vmem:[%s2260_s14 + $0x10] sm:$0xff] %v1576_v24 }
 0x4ac   : >> { %s2783_s19 = smov (%p1579_p2, %s1578_s19), 0  ;;  %1568 = sbr.rel (!%p1565_p3) target bundleno = 1193 (0x4a9), region = 185 }
 0x4ad   : >> { %s1581_s26 = smul.u32 24, %s2783_s19  ;;  %s2267_s23 = smov %s2783_s19  }
 0x4af   : >> { %s1583_s18 = scalar_lea.vmem %s2703_s16, %s1581_s26 [#allocation7]   ;;  %s1584_s14 = scalar_lea.vmem %s2715_s30, %s1581_s26  }
 0x4b3 PF: > { %2136 = sdivrem.u32 %s2781_s20, 3 }
 0x4b4   : > { %s1852_s17 = smul.u32 24, %s2721_s27 }
 0x4b6   : > { %s1589_s24 = scalar_lea.vmem %s2703_s16, %s1852_s17 [#allocation7]   ;;  %s1591_s25 = scalar_lea.vmem %s2715_s30, %s1852_s17  }
 0x4bc   : > { %s2137_s29 = spop.drf %2136 }
 0x4bd   : > { %p1854_p5 = scmp.le.s32.totalorder %s2137_s29, 0 }
 0x4be   : > { %s2274_s21 = smov (!%p1854_p5), %s1591_s25   ;;  %s2278_s28 = smov (!%p1854_p5), %s1589_s24  }
 0x4bf   : > { %1698 = sbr.rel (%p1854_p5) target bundleno = 1232 (0x4d0), region = 190  ;;  %s2282_s23 = smov (!%p1854_p5), 0  }
 0x4c0   : > { %s2286_s14 = smov (!%p1854_p5), 0  }
 0x4c6 LB: >> { %v1601_v25 = vld [vmem:[%s2280_s28] sm:$0xff]  ;;  %s1603_s18 = sadd.s32 1, %s2284_s23  ;;  %s1595_s14 = sadd.s32 1, %s2288_s14   ;;  %s2288_s14 = sphi %s2286_s14, %s1595_s14   ;;  %s2284_s23 = sphi %s2282_s23, %s2283_s23   ;;  %s2280_s28 = sphi %s2278_s28, %s1608_s28   ;;  %s2276_s21 = sphi %s2274_s21, %s1609_s21  }
 0x4c7   : >> { %1602 = vst [vmem:[%s2276_s21] sm:$0xff] %v1601_v25  ;;  %p1604_p8 = scmp.ge.s32.totalorder %s1603_s18, %s2137_s29  ;;  %p1594_p10 = scmp.ge.s32.totalorder %s1595_s14, %s2137_s29 }
 0x4c9   : >> { %s2785_s18 = smov (%p1604_p8, %s1603_s18), 0  ;;  %1597 = sbr.rel (!%p1594_p10) target bundleno = 1222 (0x4c6), region = 196 }
 0x4ca   : >> { %s1855_s16 = sshll.u32 %s2785_s18, 3  ;;  %s2283_s23 = smov %s2785_s18  }
 0x4cb   : >> { %s1608_s28 = scalar_lea.vmem %s1589_s24, %s1855_s16 [#allocation7]   ;;  %s1609_s21 = scalar_lea.vmem %s1591_s25, %s1855_s16  }
 0x4d0 PF: > { %s2777_s22 = sld [smem:[#allocation11_spill]]  ;;  %s2778_s20 = sld [smem:[#allocation10_spill]] }
 0x4d1   : > { %s2779_s21 = sld [smem:[#allocation12_spill]] }
 0x4d6   : > { %p26_p11 = scmp.ge.s32.totalorder %s2777_s22, 5  }
 0x4d8   :  { %28 = sbr.rel (!%p26_p11) target bundleno = 6 (0x6), region = 207 }
 0x4df   :  { %1625 = vsyncpa [#allocation4], 1 }
 0x4e0   :  { %1627 = vsyncpa [#allocation4 + $0x1], 1 }
 0x4e1   :  { %1628 = vsyncpa [#allocation6], 1 }

</bundles_post_ra>
